<compile_context>
chip_gen: v5e
topology: v5e:2x2
jax: 0.10.0
libtpu: 0.0.40
codegen_flags: <defaults>
</compile_context>

<pallas_src>
import math

import jax
import jax.numpy as jnp
from jax.experimental import pallas as pl
from jax.experimental.pallas import tpu as pltpu


# Large finite negative instead of -inf: identical softmax for rows with at
# least one unmasked entry, but avoids NaN (exp(-inf - -inf)) on fully-masked
# rows (PyTorch's float('-inf') would produce NaN there).
_MASK_VALUE = -1e30


def _vmem_budget_bytes():
    """Generation-aware VMEM budget: ~75% of physical, capped at 100 MiB."""
    cap = 128 * 1024 * 1024
    try:
        info = pltpu.get_tpu_info()
        cap = int(getattr(info, "vmem_capacity_bytes", cap) or cap)
    except Exception:
        pass
    # v5e/v6e (128 MiB) -> 96 MiB; v7x (64 MiB) -> 48 MiB.
    return min((cap * 3) // 4, 100 * 1024 * 1024)


def _vmem_estimate(tb, tq, S, D, mask_bytes, attn_bytes):
    """Rough per-grid-step VMEM residency in bytes."""
    kv = 2 * 2 * tb * S * D * 4        # K + V blocks, double-buffered
    qio = 2 * 2 * tb * tq * D * 4      # q in + out blocks, double-buffered
    mb = 2 * tb * tq * S * mask_bytes  # mask block (0 if no mask)
    ab = 2 * tb * tq * S * attn_bytes  # attn output block (0 if not returned)
    tmp = 3 * tb * tq * S * 4          # in-kernel scores / exp / attn temporaries
    return kv + qio + mb + ab + tmp


def _choose_tiles(B, S, D, mask_bytes, attn_bytes, budget):
    """Pick (TB, TQ): batch entries packed per step and the query tile."""
    tq_cands = ([S] if S <= 1024 else []) + [
        t for t in (1024, 512, 256, 128, 64, 32, 16, 8) if t < S
    ]
    # Pack several batches per grid step only when the per-batch K/V block is
    # small (amortizes per-step pipeline overhead, feeds the MXU).
    if S * D * 4 <= 512 * 1024:
        tb_cands = sorted({min(B, 8), min(B, 4), min(B, 2), 1}, reverse=True)
    else:
        tb_cands = [1]
    for tb in tb_cands:
        for tq in tq_cands:
            if _vmem_estimate(tb, tq, S, D, mask_bytes, attn_bytes) <= budget:
                return tb, tq
    # TODO(synk): flash-style key-axis tiling (online softmax) for sequences so
    # long that even TQ=8 with full-(S,D) K/V does not fit the VMEM budget.
    return 1, 8


def _make_kernel(has_mask, write_attn, d_k, compute_dtype):
    inv_sqrt_dk = 1.0 / math.sqrt(float(d_k))

    def kernel(*refs):
        if has_mask:
            q_ref, k_ref, v_ref, m_ref = refs[:4]
            out_refs = refs[4:]
        else:
            q_ref, k_ref, v_ref = refs[:3]
            m_ref = None
            out_refs = refs[3:]
        out_ref = out_refs[0]
        attn_ref = out_refs[1] if write_attn else None

        # Fold 1/sqrt(d_k) into the (TB, TQ, D) q tile, then cast operands to
        # the MXU compute dtype (bf16 by default) with f32 accumulation.
        q = (q_ref[...] * jnp.float32(inv_sqrt_dk)).astype(compute_dtype)  # (TB,TQ,D)
        k = k_ref[...].astype(compute_dtype)                               # (TB,S,D)
        v = v_ref[...].astype(compute_dtype)                               # (TB,S,D)

        # scores = q @ k^T, contracting D (batched over TB).
        scores = jnp.einsum("bqd,bkd->bqk", q, k,
                            preferred_element_type=jnp.float32)            # (TB,TQ,S)

        if has_mask:
            # Mask streams in the caller's dtype; the ==0 test lives here.
            scores = jnp.where(m_ref[...] == 0, jnp.float32(_MASK_VALUE), scores)

        # Numerically-stable softmax over the key axis (f32 throughout).
        row_max = jnp.max(scores, axis=-1, keepdims=True)
        exp = jnp.exp(scores - row_max)
        denom = jnp.sum(exp, axis=-1, keepdims=True)
        # EUP approx reciprocal (own VLIW slot) + one Newton step (~1e-8 rel).
        r = pl.reciprocal(denom, approx=True)
        r = r * (2.0 - denom * r)
        attn = exp * r

        out = jnp.einsum("bqk,bkd->bqd", attn.astype(compute_dtype), v,
                         preferred_element_type=jnp.float32)               # (TB,TQ,D)

        out_ref[...] = out.astype(out_ref.dtype)
        if write_attn:
            attn_ref[...] = attn.astype(attn_ref.dtype)

    return kernel


def scale_dot_attention(q, k, v, mask=None, *, d_k=None, return_attn=True,
                        mxu_bf16=True, attn_dtype=jnp.float32):
    """Pallas implementation of ScaleDotattention.forward.

    q, k, v: (B, S, D) float32.  mask: optional (B, S, S), 0 = masked out
    (any numeric dtype; bool is converted to int8).
    Returns (output, attn) when return_attn=True (PyTorch parity), else just
    output (skips the O(S^2) attention-weights writeback).
    mxu_bf16=True runs the matmuls on the bf16 MXU with f32 accumulation
    (~3x throughput); set False for strict 1e-5 parity with the f32 reference.
    """
    B, S, D = q.shape
    if d_k is None:
        d_k = D
    has_mask = mask is not None
    if has_mask and mask.dtype == jnp.bool_:
        mask = mask.astype(jnp.int8)  # bool refs are awkward on TPU; 1B stream

    mask_bytes = mask.dtype.itemsize if has_mask else 0
    attn_bytes = jnp.dtype(attn_dtype).itemsize if return_attn else 0

    budget = _vmem_budget_bytes()
    TB, TQ = _choose_tiles(B, S, D, mask_bytes, attn_bytes, budget)
    grid = (pl.cdiv(B, TB), pl.cdiv(S, TQ))

    in_specs = [
        pl.BlockSpec((TB, TQ, D), lambda b, i: (b, i, 0)),   # q tile
        pl.BlockSpec((TB, S, D), lambda b, i: (b, 0, 0)),    # k (full seq per batch)
        pl.BlockSpec((TB, S, D), lambda b, i: (b, 0, 0)),    # v (full seq per batch)
    ]
    args = [q, k, v]
    if has_mask:
        args.append(mask)
        in_specs.append(pl.BlockSpec((TB, TQ, S), lambda b, i: (b, i, 0)))

    out_shapes = [jax.ShapeDtypeStruct((B, S, D), q.dtype)]
    out_specs = [pl.BlockSpec((TB, TQ, D), lambda b, i: (b, i, 0))]
    if return_attn:
        out_shapes.append(jax.ShapeDtypeStruct((B, S, S), attn_dtype))
        out_specs.append(pl.BlockSpec((TB, TQ, S), lambda b, i: (b, i, 0)))

    kernel = _make_kernel(has_mask, return_attn, d_k,
                          jnp.bfloat16 if mxu_bf16 else jnp.float32)

    grid_spec = pltpu.PrefetchScalarGridSpec(
        num_scalar_prefetch=0,
        grid=grid,
        in_specs=in_specs,
        out_specs=tuple(out_specs),
    )

    results = pl.pallas_call(
        kernel,
        out_shape=tuple(out_shapes),
        grid_spec=grid_spec,
        compiler_params=pltpu.CompilerParams(
            # Batch outer / query-tile inner, both independent: megacore-friendly,
            # and each core keeps its resident K/V block across the inner axis.
            dimension_semantics=("parallel", "parallel"),
            vmem_limit_bytes=budget,
        ),
    )(*args)

    if return_attn:
        return results[0], results[1]
    return results[0]


def _reference(q, k, v, mask, d_k):
    scores = jnp.einsum("bqd,bkd->bqk", q, k) / jnp.sqrt(jnp.float32(d_k))
    if mask is not None:
        scores = jnp.where(mask == 0, -jnp.inf, scores)
    attn = jax.nn.softmax(scores, axis=-1)
    out = jnp.einsum("bqk,bkd->bqd", attn, v)
    return out, attn


if __name__ == "__main__":
    B, S, D = 2, 8, 32  # batch, seq, head_dim (d_k = D)
    key = jax.random.PRNGKey(0)
    kq, kk, kv, km = jax.random.split(key, 4)

    q = jax.random.normal(kq, (B, S, D), dtype=jnp.float32)
    k = jax.random.normal(kk, (B, S, D), dtype=jnp.float32)
    v = jax.random.normal(kv, (B, S, D), dtype=jnp.float32)
    # Deterministic mask with some zeros but no fully-masked rows.
    mask = (jax.random.uniform(km, (B, S, S)) > 0.3).astype(jnp.float32)
    mask = mask.at[:, :, 0].set(1.0)

    # Default fast path: bf16 MXU operands, f32 accumulation.
    out_u, attn_u = scale_dot_attention(q, k, v, mask=None, d_k=D)
    out_m, attn_m = scale_dot_attention(q, k, v, mask=mask, d_k=D)
    # Strict f32 parity path.
    out_x, attn_x = scale_dot_attention(q, k, v, mask=mask, d_k=D, mxu_bf16=False)
    # Fast path: skip the attention-weights writeback entirely.
    out_fast = scale_dot_attention(q, k, v, mask=mask, d_k=D, return_attn=False)
    jax.block_until_ready((out_u, attn_u, out_m, attn_m, out_x, attn_x, out_fast))

    ref_out_u, ref_attn_u = _reference(q, k, v, None, D)
    ref_out_m, ref_attn_m = _reference(q, k, v, mask, D)

    # bf16-MXU paths: relaxed tolerance (bf16 operand rounding).
    assert jnp.allclose(out_u, ref_out_u, atol=3e-2, rtol=3e-2)
    assert jnp.allclose(attn_u, ref_attn_u, atol=3e-2, rtol=3e-2)
    assert jnp.allclose(out_m, ref_out_m, atol=3e-2, rtol=3e-2)
    assert jnp.allclose(attn_m, ref_attn_m, atol=3e-2, rtol=3e-2)
    assert jnp.allclose(out_fast, ref_out_m, atol=3e-2, rtol=3e-2)
    # Strict f32 path: 1e-5 parity with the reference.
    assert jnp.allclose(out_x, ref_out_m, atol=1e-5, rtol=1e-5)
    assert jnp.allclose(attn_x, ref_attn_m, atol=1e-5, rtol=1e-5)

    print("KERNEL_OK")
</pallas_src>

<mosaic_0001>
module attributes {stable_mosaic.version = 11 : i64} {
  func.func @kernel(%arg0: i32, %arg1: i32, %arg2: memref<2x8x32xf32, #tpu.memory_space<vmem>>, %arg3: memref<2x8x32xf32, #tpu.memory_space<vmem>>, %arg4: memref<2x8x32xf32, #tpu.memory_space<vmem>>, %arg5: memref<2x8x32xf32, #tpu.memory_space<vmem>>, %arg6: memref<2x8x8xf32, #tpu.memory_space<vmem>>) attributes {dimension_semantics = [#tpu.dimension_semantics<parallel>, #tpu.dimension_semantics<parallel>], iteration_bounds = array<i64: 1, 1>, scalar_prefetch = 0 : i64, scratch_operands = 0 : i64, tpu.core_type = #tpu.core_type<tc>, window_params = [{transform_indices = @transform_0, window_bounds = array<i64: 2, 8, 32>}, {transform_indices = @transform_1, window_bounds = array<i64: 2, 8, 32>}, {transform_indices = @transform_2, window_bounds = array<i64: 2, 8, 32>}, {transform_indices = @transform_3, window_bounds = array<i64: 2, 8, 32>}, {transform_indices = @transform_4, window_bounds = array<i64: 2, 8, 8>}]} {
    %c0 = arith.constant 0 : index
    %c0_0 = arith.constant 0 : index
    %c0_1 = arith.constant 0 : index
    %0 = vector.load %arg2[%c0, %c0_0, %c0_1] : memref<2x8x32xf32, #tpu.memory_space<vmem>>, vector<2x8x32xf32>
    %cst = arith.constant 0.176776692 : f32
    %1 = vector.broadcast %cst : f32 to vector<2x8x32xf32>
    %2 = arith.mulf %0, %1 : vector<2x8x32xf32>
    %3 = arith.truncf %2 : vector<2x8x32xf32> to vector<2x8x32xbf16>
    %c0_2 = arith.constant 0 : index
    %c0_3 = arith.constant 0 : index
    %c0_4 = arith.constant 0 : index
    %4 = vector.load %arg3[%c0_2, %c0_3, %c0_4] : memref<2x8x32xf32, #tpu.memory_space<vmem>>, vector<2x8x32xf32>
    %5 = arith.truncf %4 : vector<2x8x32xf32> to vector<2x8x32xbf16>
    %c0_5 = arith.constant 0 : index
    %c0_6 = arith.constant 0 : index
    %c0_7 = arith.constant 0 : index
    %6 = vector.load %arg4[%c0_5, %c0_6, %c0_7] : memref<2x8x32xf32, #tpu.memory_space<vmem>>, vector<2x8x32xf32>
    %7 = arith.truncf %6 : vector<2x8x32xf32> to vector<2x8x32xbf16>
    "tpu.trace_start"() <{level = 10 : i32, message = "bqd,bkd->bqk"}> : () -> ()
    %cst_8 = arith.constant dense<0.000000e+00> : vector<2x8x8xf32>
    %8 = tpu.matmul %3, %5, %cst_8 {dimension_numbers = #tpu.dot_dimension_numbers<[2], [2], [1], [1], [0, 0, 0, 1, 1, 1], [0], [0]>} : vector<2x8x32xbf16>, vector<2x8x32xbf16>, vector<2x8x8xf32> -> vector<2x8x8xf32>
    "tpu.trace_stop"() : () -> ()
    %cst_9 = arith.constant dense<0xFF800000> : vector<2x8xf32>
    %9 = vector.multi_reduction <maximumf>, %8, %cst_9 [2] : vector<2x8x8xf32> to vector<2x8xf32>
    %10 = vector.shape_cast %9 : vector<2x8xf32> to vector<2x8x1xf32>
    %11 = vector.broadcast %10 : vector<2x8x1xf32> to vector<2x8x8xf32>
    %12 = arith.subf %8, %11 : vector<2x8x8xf32>
    %13 = math.exp %12 : vector<2x8x8xf32>
    %cst_10 = arith.constant dense<0.000000e+00> : vector<2x8xf32>
    %14 = vector.multi_reduction <add>, %13, %cst_10 [2] : vector<2x8x8xf32> to vector<2x8xf32>
    %15 = vector.shape_cast %14 : vector<2x8xf32> to vector<2x8x1xf32>
    %16 = tpu.reciprocal %15 {approx = true} : vector<2x8x1xf32> -> vector<2x8x1xf32>
    %17 = arith.mulf %15, %16 : vector<2x8x1xf32>
    %cst_11 = arith.constant 2.000000e+00 : f32
    %18 = vector.broadcast %cst_11 : f32 to vector<2x8x1xf32>
    %19 = arith.subf %18, %17 : vector<2x8x1xf32>
    %20 = arith.mulf %16, %19 : vector<2x8x1xf32>
    %21 = vector.broadcast %20 : vector<2x8x1xf32> to vector<2x8x8xf32>
    %22 = arith.mulf %13, %21 : vector<2x8x8xf32>
    %23 = arith.truncf %22 : vector<2x8x8xf32> to vector<2x8x8xbf16>
    "tpu.trace_start"() <{level = 10 : i32, message = "bqk,bkd->bqd"}> : () -> ()
    %cst_12 = arith.constant dense<0.000000e+00> : vector<2x8x32xf32>
    %24 = tpu.matmul %23, %7, %cst_12 {dimension_numbers = #tpu.dot_dimension_numbers<[2], [1], [1], [2], [0, 0, 0, 1, 1, 2], [0], [0]>} : vector<2x8x8xbf16>, vector<2x8x32xbf16>, vector<2x8x32xf32> -> vector<2x8x32xf32>
    "tpu.trace_stop"() : () -> ()
    %c0_13 = arith.constant 0 : index
    %c0_14 = arith.constant 0 : index
    %c0_15 = arith.constant 0 : index
    %25 = vector.load %arg5[%c0_13, %c0_14, %c0_15] : memref<2x8x32xf32, #tpu.memory_space<vmem>>, vector<2x8x32xf32>
    tpu.vector_store %arg5[%c0_13, %c0_14, %c0_15], %24 {strides = array<i32>} : memref<2x8x32xf32, #tpu.memory_space<vmem>>, vector<2x8x32xf32>,
    %c0_16 = arith.constant 0 : index
    %c0_17 = arith.constant 0 : index
    %c0_18 = arith.constant 0 : index
    %26 = vector.load %arg6[%c0_16, %c0_17, %c0_18] : memref<2x8x8xf32, #tpu.memory_space<vmem>>, vector<2x8x8xf32>
    tpu.vector_store %arg6[%c0_16, %c0_17, %c0_18], %22 {strides = array<i32>} : memref<2x8x8xf32, #tpu.memory_space<vmem>>, vector<2x8x8xf32>,
    return
  }
  func.func @transform_0(%arg0: i32, %arg1: i32) -> (i32, i32, i32) {
    %c0_i32 = arith.constant 0 : i32
    %c0_i32_0 = arith.constant 0 : i32
    return %arg0, %arg1, %c0_i32 : i32, i32, i32
  }
  func.func @transform_1(%arg0: i32, %arg1: i32) -> (i32, i32, i32) {
    %c0_i32 = arith.constant 0 : i32
    %c0_i32_0 = arith.constant 0 : i32
    %c0_i32_1 = arith.constant 0 : i32
    return %arg0, %c0_i32, %c0_i32_0 : i32, i32, i32
  }
  func.func @transform_2(%arg0: i32, %arg1: i32) -> (i32, i32, i32) {
    %c0_i32 = arith.constant 0 : i32
    %c0_i32_0 = arith.constant 0 : i32
    %c0_i32_1 = arith.constant 0 : i32
    return %arg0, %c0_i32, %c0_i32_0 : i32, i32, i32
  }
  func.func @transform_3(%arg0: i32, %arg1: i32) -> (i32, i32, i32) {
    %c0_i32 = arith.constant 0 : i32
    %c0_i32_0 = arith.constant 0 : i32
    return %arg0, %arg1, %c0_i32 : i32, i32, i32
  }
  func.func @transform_4(%arg0: i32, %arg1: i32) -> (i32, i32, i32) {
    %c0_i32 = arith.constant 0 : i32
    %c0_i32_0 = arith.constant 0 : i32
    return %arg0, %arg1, %c0_i32 : i32, i32, i32
  }
}

</mosaic_0001>

<bundles_post_ra>
// kernel: tpu_custom_call.1
= control target key start
LH: loop header
LB: loop body
LE: loop exit
PB: predicated region body
PF: predicated region fallthrough
CT: control target
= control target key end

     0   :  { %10 = vsyncpa [#allocation3], 0  ;;  %s454_s0 = inlined_call_operand.hbm [shape: f32[2,8,32], index: 0, kind: input, shape index: {}]   ;;  %s455_s1 = inlined_call_operand.hbm [shape: f32[2,8,32], index: 1, kind: input, shape index: {}]   ;;  %s456_s2 = inlined_call_operand.hbm [shape: f32[2,8,32], index: 2, kind: input, shape index: {}]   ;;  %s457_s3 = inlined_call_operand.hbm [shape: f32[2,8,32], index: 3, kind: output, shape index: {0}]   ;;  %s458_s4 = inlined_call_operand.hbm [shape: f32[2,8,8], index: 4, kind: output, shape index: {1}]  }
   0x1   :  { %11 = vsyncpa [#allocation6], 0 }
   0x2   :  { %12 = vsyncpa [#allocation4], 0 }
   0x3   :  { %13 = vsyncpa [#allocation10], 0  ;;  %s31_s17 = sshll.u32 %s455_s1, 4  ;;  %s378_s18 = smov [#allocation5]   ;;  %s32_s17 = int_to_ptr.hbm [resolvable:$true] %s31_s17 }
   0x4   :  { %s33_s19 = sshll.u32 %s378_s18, 4  ;;  %s18_s22 = sshll.u32 %s454_s0, 4  ;;  %s34_s19 = int_to_ptr.vmem [resolvable:$true] %s33_s19  ;;  %s19_s22 = int_to_ptr.hbm [resolvable:$true] %s18_s22 }
   0x5   :  { %s379_s23 = smov 128   ;;  %s380_s24 = smov 8  }
   0x6   :  { %39 = dma.hbm_to_vmem [thread:$0]  %s32_s17, 256, %s34_s19, [#allocation6], %s379_s23, %s379_s23, %s380_s24  }
   0x7   :  { %s381_s25 = smov [#allocation2]   ;;  %s44_s1 = sshll.u32 %s456_s2, 4  ;;  %s45_s1 = int_to_ptr.hbm [resolvable:$true] %s44_s1 }
   0x8   :  { %s20_s26 = sshll.u32 %s381_s25, 4  ;;  %s382_s0 = smov [#allocation7]   ;;  %s21_s26 = int_to_ptr.vmem [resolvable:$true] %s20_s26 }
   0x9   :  { %26 = dma.hbm_to_vmem [thread:$0]  %s19_s22, 256, %s21_s26, [#allocation3], %s379_s23, %s379_s23, %s380_s24  }
   0xa   :  { %s46_s29 = sshll.u32 %s382_s0, 4  ;;  %s47_s29 = int_to_ptr.vmem [resolvable:$true] %s46_s29 }
   0xb   :  { %52 = dma.hbm_to_vmem [thread:$0]  %s45_s1, 256, %s47_s29, [#allocation6], %s379_s23, %s379_s23, %s380_s24  }
   0xc   :  { %370 = dma.done.wait [#allocation3], 256  }
   0xd   :  { %371 = vsyncadd [#allocation3], 4294967040 }
   0xe   :  { %372 = dma.done.wait [#allocation6], 512  }
   0xf   :  { %373 = vsyncadd [#allocation6], 4294966784  ;;  %v72_v0 = vld [vmem:[#allocation5] sm:$0xff]  ;;  %vm80_vm0 = vcmask 261120   ;;  %v73_v1 = vld [vmem:[#allocation5 + $0x8] sm:$0xff]  ;;  %vm119_vm1 = vcmask 64512  }
  0x10   :  { %v66_v2 = vld [vmem:[#allocation2] sm:$0xff]  ;;  %v74_v3 = vpack.c.bf16 %v72_v0, %v72_v0  ;;  %v75_v4 = vpack.c.bf16 %v73_v1, %v73_v1  ;;  %v67_v5 = vld [vmem:[#allocation2 + $0x8] sm:$0xff]  ;;  %vm153_vm2 = vcmask 1043456   ;;  %s383_s2 = smov [#allocation9]   ;;  %s212_s7 = sshll.u32 %s458_s4, 4  ;;  %s213_s7 = int_to_ptr.hbm [resolvable:$true] %s212_s7 }
  0x11   :  { %v68_v8 = vmul.f32 0.17677669, %v66_v2  ;;  %v69_v9 = vmul.f32 0.17677669, %v67_v5  ;;  %v76_v28 = vld [vmem:[#allocation7] sm:$0xff]  ;;  %v77_v31 = vld [vmem:[#allocation7 + $0x8] sm:$0xff] }
  0x12   :  { %v85_v6 = vsel %vm80_vm0, %v74_v3, 0  ;;  %v104_v7 = vsel %vm80_vm0, %v75_v4, 0  ;;  %v78_v29 = vpack.c.bf16 %v76_v28, %v76_v28  ;;  %v79_v32 = vpack.c.bf16 %v77_v31, %v77_v31  ;;  %s210_s30 = sshll.u32 %s383_s2, 4  ;;  %s384_s8 = smov [#allocation8]   ;;  %s211_s30 = int_to_ptr.vmem [resolvable:$true] %s210_s30 }
  0x13   :  { %94 = vmatpush.bf16.xpose.msra.mxu0 %v85_v6  ;;  %113 = vmatpush.bf16.xpose.msra.mxu1 %v104_v7  ;;  %v70_v10 = vpack.c.bf16 %v68_v8, %v68_v8  ;;  %v71_v11 = vpack.c.bf16 %v69_v9, %v69_v9  ;;  %s197_s9 = sshll.u32 %s384_s8, 4  ;;  %s199_s12 = sshll.u32 %s457_s3, 4  ;;  %s198_s9 = int_to_ptr.vmem [resolvable:$true] %s197_s9  ;;  %s200_s12 = int_to_ptr.hbm [resolvable:$true] %s199_s12 }
  0x14   :  { %v155_v30 = vsel %vm153_vm2, %v78_v29, 0  ;;  %v174_v33 = vsel %vm153_vm2, %v79_v32, 0 }
  0x15   :  { %164 = vmatpush.bf16.msra.mxu2 %v155_v30  ;;  %183 = vmatpush.bf16.msra.mxu3 %v174_v33 }
  0x1a   :  { %231 = vmatmul.msk.bf16.vlgmr.msra.gmra.mxu0 %vm80_vm0, %v70_v10  ;;  %232 = vmatmul.msk.bf16.vlgmr.msra.gmra.mxu1 %vm80_vm0, %v71_v11 }
  0x97   :  { %v96_v12 = vpop.f32.mrf.mxu0  ;;  %v115_v13 = vpop.f32.mrf.mxu1 }
  0x98   :  { %v120_v14 = vsel %vm119_vm1, %v96_v12, -inf  ;;  %v123_v15 = vsel %vm119_vm1, %v115_v13, -inf }
  0x99   :  { %121 = vmax.xlane.f32.xlu0 %v120_v14 }
  0x9f   :  { %v98_v16 = vpop.f32.mrf.mxu0  ;;  %v117_v17 = vpop.f32.mrf.mxu1 }
  0xa1   :  { %124 = vmax.xlane.f32.xlu0 %v123_v15 }
 0x10c   :  { %v122_v18 = vpop.xlane.xlu0 %121 }
 0x10d   :  { %v126_v19 = vsub.f32 %v96_v12, %v122_v18 }
 0x10f   :  { %v128_v20 = vmul.f32 1.442695, %v126_v19 }
 0x111   :  { %242 = vpow2.f32 %v128_v20 }
 0x114   :  { %v125_v21 = vpop.xlane.xlu0 %124 }
 0x115   :  { %v127_v22 = vsub.f32 %v115_v13, %v125_v21 }
 0x117   :  { %v243_v23 = vpop.eup %242  ;;  %v130_v24 = vmul.f32 1.442695, %v127_v22 }
 0x118   :  { %v132_v25 = vsel %vm119_vm1, %v243_v23, 0.0 }
 0x119   :  { %244 = vpow2.f32 %v130_v24  ;;  %133 = vadd.xlane.f32.xlu1 %v132_v25 }
 0x11f   :  { %v245_v26 = vpop.eup %244 }
 0x120   :  { %v135_v27 = vsel %vm119_vm1, %v245_v26, 0.0 }
 0x121   :  { %136 = vadd.xlane.f32.xlu1 %v135_v27 }
 0x18c   :  { %v134_v34 = vpop.xlane.xlu1 %133 }
 0x18d   :  { %246 = vrcp.f32 %v134_v34 }
 0x193   :  { %v247_v35 = vpop.eup %246 }
 0x194   :  { %v140_v36 = vmul.f32 %v247_v35, %v134_v34  ;;  %v137_v37 = vpop.xlane.xlu1 %136 }
 0x195   :  { %248 = vrcp.f32 %v137_v37 }
 0x196   :  { %v142_v38 = vsub.f32 2.0, %v140_v36 }
 0x198   :  { %v144_v39 = vmul.f32 %v247_v35, %v142_v38 }
 0x19a   :  { %v146_v40 = vmul.f32 %v243_v23, %v144_v39 }
 0x19b   :  { %v249_v41 = vpop.eup %248 }
 0x19c   :  { %v141_v42 = vmul.f32 %v249_v41, %v137_v37  ;;  %v148_v43 = vpack.c.bf16 %v146_v40, %v146_v40  ;;  %191 = vst.msk [vmem:[#allocation9] sm:$0xff] %vm119_vm1, %v146_v40 }
 0x19e   :  { %v143_v44 = vsub.f32 2.0, %v141_v42  ;;  %233 = vmatmul.msk.bf16.vlgmr.msra.gmra.mxu2 %vm119_vm1, %v148_v43 }
 0x1a0   :  { %v145_v45 = vmul.f32 %v249_v41, %v143_v44 }
 0x1a2   :  { %v147_v46 = vmul.f32 %v245_v26, %v145_v45 }
 0x1a4   :  { %192 = vst.msk [vmem:[#allocation9 + $0x8] sm:$0xff] %vm119_vm1, %v147_v46  ;;  %v149_v47 = vpack.c.bf16 %v147_v46, %v147_v46 }
 0x1a5   :  { %218 = dma.vmem_to_hbm [thread:$0]  %s211_s30, 256, %s213_s7, [#allocation10], %s379_s23, %s379_s23, %s380_s24  }
 0x1a6   :  { %234 = vmatmul.msk.bf16.vlgmr.msra.gmra.mxu3 %vm119_vm1, %v149_v47 }
 0x221   :  { %v166_v48 = vpop.f32.mrf.mxu2 }
 0x222   :  { %189 = vst.msk [vmem:[#allocation8] sm:$0xff] %vm80_vm0, %v166_v48 }
 0x229   :  { %v168_v49 = vpop.f32.mrf.mxu2  ;;  %v185_v50 = vpop.f32.mrf.mxu3 }
 0x22a   :  { %190 = vst.msk [vmem:[#allocation8 + $0x8] sm:$0xff] %vm80_vm0, %v185_v50 }
 0x22b   :  { %205 = dma.vmem_to_hbm [thread:$0]  %s198_s9, 256, %s200_s12, [#allocation4], %s379_s23, %s379_s23, %s380_s24  }
 0x231   :  { %v187_v51 = vpop.f32.mrf.mxu3 }
 0x232   :  { %374 = dma.done.wait [#allocation4], 256  }
 0x233   :  { %375 = vsyncadd [#allocation4], 4294967040 }
 0x234   :  { %376 = dma.done.wait [#allocation10], 256  }
 0x235   :  { %377 = vsyncadd [#allocation10], 4294967040 }
 0x236   :  { %227 = vsyncpa [#allocation3], 1 }
 0x237   :  { %228 = vsyncpa [#allocation6], 1 }
 0x238   :  { %229 = vsyncpa [#allocation4], 1 }
 0x239   :  { %230 = vsyncpa [#allocation10], 1 }

</bundles_post_ra>
